<compile_context>
chip_gen: v7x
topology: tpu7x:2x2x1
jax: 0.10.0
libtpu: 0.0.40
codegen_flags: <defaults>
</compile_context>

<pallas_src>
import functools

import jax
import jax.numpy as jnp
from jax.experimental import pallas as pl
from jax.experimental.pallas import tpu as pltpu

NUM_FEATURES = 8     # stand-in for config.NUM_FEATURES
HIDDEN_SIZE = 32
BATCH = 2
SEQ = 8


def _lstm_encoder_kernel(x_ref, wih_ref, whh_ref, bih_ref, bhh_ref,
                         out_ref, hn_ref, cn_ref, *, batch, seq):
    """Single invocation, everything VMEM-resident.

    x_ref  : (B*T, F)   input, rows ordered (b, t) i.e. row = b*T + t
    wih_ref: (4H, F)    W_ih (PyTorch layout)
    whh_ref: (4H, H)    W_hh (PyTorch layout)
    bih_ref: (1, 4H)    b_ih
    bhh_ref: (1, 4H)    b_hh
    out_ref: (B, T*H)   all hidden states, lane-dense (column block t = h_t)
    hn_ref : (B, H)     final hidden state
    cn_ref : (B, H)     final cell state
    """
    B, T = batch, seq
    H = whh_ref.shape[1]

    # One-time prep (off the serial critical path): transposes on the XLU, bias add on VPU.
    wih_t = wih_ref[...].T                               # (F, 4H)
    whh_t = whh_ref[...].T                               # (H, 4H)
    bias = bih_ref[...] + bhh_ref[...]                   # (1, 4H)

    # Fused input projection for ALL timesteps: one (B*T, F) x (F, 4H) MXU dot.
    gx = jnp.dot(x_ref[...], wih_t,
                 preferred_element_type=jnp.float32) + bias        # (B*T, 4H)
    gx = gx.reshape(B, T, 4 * H)                                    # free leading-dim split

    h = jnp.zeros((B, H), jnp.float32)
    c = jnp.zeros((B, H), jnp.float32)
    hs = []

    # T is a compile-time constant -> this Python loop fully unrolls
    # (full LLO scheduler visibility; per-step work is one small MXU dot + gate math).
    for t in range(T):
        gates = gx[:, t, :] + jnp.dot(h, whh_t,
                                      preferred_element_type=jnp.float32)   # (B, 4H)
        # One sigmoid + one tanh over the full 128-lane gate tile (3 EUP pushes/step total
        # including tanh(c), down from 5), then slice the individual gates.
        sig = jax.nn.sigmoid(gates)
        tnh = jnp.tanh(gates)
        i_g = sig[:, 0 * H:1 * H]
        f_g = sig[:, 1 * H:2 * H]
        g_g = tnh[:, 2 * H:3 * H]
        o_g = sig[:, 3 * H:4 * H]
        c = f_g * c + i_g * g_g
        h = o_g * jnp.tanh(c)
        hs.append(h)

    # Single lane-dense store of all hidden states (batch-first); finals written once.
    out_ref[...] = jnp.concatenate(hs, axis=-1)          # (B, T*H)
    hn_ref[...] = h
    cn_ref[...] = c


@jax.jit
def encoder_forward(x, w_ih, w_hh, b_ih, b_hh):
    """x: (B, T, F). Returns (out (B,T,H), (h_n (1,B,H), c_n (1,B,H))) like nn.LSTM."""
    B, T, F = x.shape
    H = w_hh.shape[1]

    vmem = pl.BlockSpec(memory_space=pltpu.MemorySpace.VMEM)
    kernel = functools.partial(_lstm_encoder_kernel, batch=B, seq=T)

    out_flat, h_n, c_n = pl.pallas_call(
        kernel,
        out_shape=(
            jax.ShapeDtypeStruct((B, T * H), jnp.float32),   # all hidden states, lane-dense
            jax.ShapeDtypeStruct((B, H), jnp.float32),       # h_n
            jax.ShapeDtypeStruct((B, H), jnp.float32),       # c_n
        ),
        in_specs=[vmem, vmem, vmem, vmem, vmem],
        out_specs=(vmem, vmem, vmem),
    )(
        # All wrapper-side ops below are bitcast-equivalent reshapes (no extra XLA compute).
        x.reshape(B * T, F).astype(jnp.float32),
        w_ih.astype(jnp.float32),
        w_hh.astype(jnp.float32),
        b_ih.reshape(1, 4 * H).astype(jnp.float32),
        b_hh.reshape(1, 4 * H).astype(jnp.float32),
    )

    out = out_flat.reshape(B, T, H)                      # free minor-dim split, batch-first
    return out, (h_n[None], c_n[None])                   # match PyTorch (1, B, H)


def _reference_lstm(x, w_ih, w_hh, b_ih, b_hh):
    """Pure-JAX reference (same math as torch.nn.LSTM, single layer, batch_first)."""
    B, T, F = x.shape
    H = w_hh.shape[1]

    def step(carry, x_t):
        h, c = carry
        gates = x_t @ w_ih.T + b_ih + h @ w_hh.T + b_hh
        i = jax.nn.sigmoid(gates[:, 0 * H:1 * H])
        f = jax.nn.sigmoid(gates[:, 1 * H:2 * H])
        g = jnp.tanh(gates[:, 2 * H:3 * H])
        o = jax.nn.sigmoid(gates[:, 3 * H:4 * H])
        c_new = f * c + i * g
        h_new = o * jnp.tanh(c_new)
        return (h_new, c_new), h_new

    h0 = jnp.zeros((B, H), jnp.float32)
    c0 = jnp.zeros((B, H), jnp.float32)
    (h_n, c_n), hs = jax.lax.scan(step, (h0, c0), jnp.transpose(x, (1, 0, 2)))
    return jnp.transpose(hs, (1, 0, 2)), (h_n[None], c_n[None])


if __name__ == "__main__":
    key = jax.random.PRNGKey(0)
    kx, k1, k2, k3, k4 = jax.random.split(key, 5)

    # deterministic synthetic parameters (shapes follow nn.LSTM(NUM_FEATURES, HIDDEN_SIZE))
    scale = 1.0 / jnp.sqrt(HIDDEN_SIZE)
    w_ih = jax.random.uniform(k1, (4 * HIDDEN_SIZE, NUM_FEATURES), jnp.float32, -scale, scale)
    w_hh = jax.random.uniform(k2, (4 * HIDDEN_SIZE, HIDDEN_SIZE), jnp.float32, -scale, scale)
    b_ih = jax.random.uniform(k3, (4 * HIDDEN_SIZE,), jnp.float32, -scale, scale)
    b_hh = jax.random.uniform(k4, (4 * HIDDEN_SIZE,), jnp.float32, -scale, scale)

    x = jax.random.normal(kx, (BATCH, SEQ, NUM_FEATURES), jnp.float32)

    out, (h_n, c_n) = encoder_forward(x, w_ih, w_hh, b_ih, b_hh)
    jax.block_until_ready((out, h_n, c_n))

    ref_out, (ref_h, ref_c) = _reference_lstm(x, w_ih, w_hh, b_ih, b_hh)
    assert out.shape == (BATCH, SEQ, HIDDEN_SIZE)
    assert h_n.shape == (1, BATCH, HIDDEN_SIZE) and c_n.shape == (1, BATCH, HIDDEN_SIZE)
    assert jnp.allclose(out, ref_out, atol=1e-5, rtol=1e-5)
    assert jnp.allclose(h_n, ref_h, atol=1e-5, rtol=1e-5)
    assert jnp.allclose(c_n, ref_c, atol=1e-5, rtol=1e-5)

    print("KERNEL_OK")
</pallas_src>

<mosaic_0001>
module attributes {stable_mosaic.version = 11 : i64} {
  func.func @_lstm_encoder_kernel(%arg0: memref<16x8xf32, #tpu.memory_space<vmem>>, %arg1: memref<128x8xf32, #tpu.memory_space<vmem>>, %arg2: memref<128x32xf32, #tpu.memory_space<vmem>>, %arg3: memref<1x128xf32, #tpu.memory_space<vmem>>, %arg4: memref<1x128xf32, #tpu.memory_space<vmem>>, %arg5: memref<2x256xf32, #tpu.memory_space<vmem>>, %arg6: memref<2x32xf32, #tpu.memory_space<vmem>>, %arg7: memref<2x32xf32, #tpu.memory_space<vmem>>) attributes {dimension_semantics = [], scalar_prefetch = 0 : i64, scratch_operands = 0 : i64, tpu.core_type = #tpu.core_type<tc>} {
    %c0 = arith.constant 0 : index
    %c0_0 = arith.constant 0 : index
    %0 = vector.load %arg1[%c0, %c0_0] : memref<128x8xf32, #tpu.memory_space<vmem>>, vector<128x8xf32>
    %1 = tpu.transpose %0, [1, 0] : vector<128x8xf32> -> vector<8x128xf32>
    %c0_1 = arith.constant 0 : index
    %c0_2 = arith.constant 0 : index
    %2 = vector.load %arg2[%c0_1, %c0_2] : memref<128x32xf32, #tpu.memory_space<vmem>>, vector<128x32xf32>
    %3 = tpu.transpose %2, [1, 0] : vector<128x32xf32> -> vector<32x128xf32>
    %c0_3 = arith.constant 0 : index
    %c0_4 = arith.constant 0 : index
    %4 = vector.load %arg3[%c0_3, %c0_4] : memref<1x128xf32, #tpu.memory_space<vmem>>, vector<1x128xf32>
    %c0_5 = arith.constant 0 : index
    %c0_6 = arith.constant 0 : index
    %5 = vector.load %arg4[%c0_5, %c0_6] : memref<1x128xf32, #tpu.memory_space<vmem>>, vector<1x128xf32>
    %6 = arith.addf %4, %5 : vector<1x128xf32>
    %c0_7 = arith.constant 0 : index
    %c0_8 = arith.constant 0 : index
    %7 = vector.load %arg0[%c0_7, %c0_8] : memref<16x8xf32, #tpu.memory_space<vmem>>, vector<16x8xf32>
    %cst = arith.constant dense<0.000000e+00> : vector<16x128xf32>
    %8 = tpu.matmul %7, %1, %cst {dimension_numbers = #tpu.dot_dimension_numbers<[1], [0], [0], [1], [0, 0, 1, 1], [], []>} : vector<16x8xf32>, vector<8x128xf32>, vector<16x128xf32> -> vector<16x128xf32>
    %9 = vector.broadcast %6 : vector<1x128xf32> to vector<16x128xf32>
    %10 = arith.addf %8, %9 : vector<16x128xf32>
    %11 = vector.shape_cast %10 : vector<16x128xf32> to vector<2x8x128xf32>
    %cst_9 = arith.constant 0.000000e+00 : f32
    %12 = vector.broadcast %cst_9 : f32 to vector<2x32xf32>
    %cst_10 = arith.constant 0.000000e+00 : f32
    %13 = vector.broadcast %cst_10 : f32 to vector<2x32xf32>
    %14 = vector.extract_strided_slice %11 {offsets = [0, 0, 0], sizes = [2, 1, 128], strides = [1, 1, 1]} : vector<2x8x128xf32> to vector<2x1x128xf32>
    %15 = vector.shape_cast %14 : vector<2x1x128xf32> to vector<2x128xf32>
    %cst_11 = arith.constant dense<0.000000e+00> : vector<2x128xf32>
    %16 = tpu.matmul %12, %3, %cst_11 {dimension_numbers = #tpu.dot_dimension_numbers<[1], [0], [0], [1], [0, 0, 1, 1], [], []>} : vector<2x32xf32>, vector<32x128xf32>, vector<2x128xf32> -> vector<2x128xf32>
    %17 = arith.addf %15, %16 : vector<2x128xf32>
    %18 = arith.negf %17 : vector<2x128xf32>
    %19 = math.exp %18 : vector<2x128xf32>
    %cst_12 = arith.constant 1.000000e+00 : f32
    %20 = vector.broadcast %cst_12 : f32 to vector<2x128xf32>
    %21 = arith.addf %20, %19 : vector<2x128xf32>
    %22 = arith.divf %20, %21 : vector<2x128xf32>
    %23 = math.tanh %17 : vector<2x128xf32>
    %24 = vector.extract_strided_slice %22 {offsets = [0, 0], sizes = [2, 32], strides = [1, 1]} : vector<2x128xf32> to vector<2x32xf32>
    %25 = vector.extract_strided_slice %22 {offsets = [0, 32], sizes = [2, 32], strides = [1, 1]} : vector<2x128xf32> to vector<2x32xf32>
    %26 = vector.extract_strided_slice %23 {offsets = [0, 64], sizes = [2, 32], strides = [1, 1]} : vector<2x128xf32> to vector<2x32xf32>
    %27 = vector.extract_strided_slice %22 {offsets = [0, 96], sizes = [2, 32], strides = [1, 1]} : vector<2x128xf32> to vector<2x32xf32>
    %28 = arith.mulf %25, %13 : vector<2x32xf32>
    %29 = arith.mulf %24, %26 : vector<2x32xf32>
    %30 = arith.addf %28, %29 : vector<2x32xf32>
    %31 = math.tanh %30 : vector<2x32xf32>
    %32 = arith.mulf %27, %31 : vector<2x32xf32>
    %33 = vector.extract_strided_slice %11 {offsets = [0, 1, 0], sizes = [2, 1, 128], strides = [1, 1, 1]} : vector<2x8x128xf32> to vector<2x1x128xf32>
    %34 = vector.shape_cast %33 : vector<2x1x128xf32> to vector<2x128xf32>
    %cst_13 = arith.constant dense<0.000000e+00> : vector<2x128xf32>
    %35 = tpu.matmul %32, %3, %cst_13 {dimension_numbers = #tpu.dot_dimension_numbers<[1], [0], [0], [1], [0, 0, 1, 1], [], []>} : vector<2x32xf32>, vector<32x128xf32>, vector<2x128xf32> -> vector<2x128xf32>
    %36 = arith.addf %34, %35 : vector<2x128xf32>
    %37 = arith.negf %36 : vector<2x128xf32>
    %38 = math.exp %37 : vector<2x128xf32>
    %cst_14 = arith.constant 1.000000e+00 : f32
    %39 = vector.broadcast %cst_14 : f32 to vector<2x128xf32>
    %40 = arith.addf %39, %38 : vector<2x128xf32>
    %41 = arith.divf %39, %40 : vector<2x128xf32>
    %42 = math.tanh %36 : vector<2x128xf32>
    %43 = vector.extract_strided_slice %41 {offsets = [0, 0], sizes = [2, 32], strides = [1, 1]} : vector<2x128xf32> to vector<2x32xf32>
    %44 = vector.extract_strided_slice %41 {offsets = [0, 32], sizes = [2, 32], strides = [1, 1]} : vector<2x128xf32> to vector<2x32xf32>
    %45 = vector.extract_strided_slice %42 {offsets = [0, 64], sizes = [2, 32], strides = [1, 1]} : vector<2x128xf32> to vector<2x32xf32>
    %46 = vector.extract_strided_slice %41 {offsets = [0, 96], sizes = [2, 32], strides = [1, 1]} : vector<2x128xf32> to vector<2x32xf32>
    %47 = arith.mulf %44, %30 : vector<2x32xf32>
    %48 = arith.mulf %43, %45 : vector<2x32xf32>
    %49 = arith.addf %47, %48 : vector<2x32xf32>
    %50 = math.tanh %49 : vector<2x32xf32>
    %51 = arith.mulf %46, %50 : vector<2x32xf32>
    %52 = vector.extract_strided_slice %11 {offsets = [0, 2, 0], sizes = [2, 1, 128], strides = [1, 1, 1]} : vector<2x8x128xf32> to vector<2x1x128xf32>
    %53 = vector.shape_cast %52 : vector<2x1x128xf32> to vector<2x128xf32>
    %cst_15 = arith.constant dense<0.000000e+00> : vector<2x128xf32>
    %54 = tpu.matmul %51, %3, %cst_15 {dimension_numbers = #tpu.dot_dimension_numbers<[1], [0], [0], [1], [0, 0, 1, 1], [], []>} : vector<2x32xf32>, vector<32x128xf32>, vector<2x128xf32> -> vector<2x128xf32>
    %55 = arith.addf %53, %54 : vector<2x128xf32>
    %56 = arith.negf %55 : vector<2x128xf32>
    %57 = math.exp %56 : vector<2x128xf32>
    %cst_16 = arith.constant 1.000000e+00 : f32
    %58 = vector.broadcast %cst_16 : f32 to vector<2x128xf32>
    %59 = arith.addf %58, %57 : vector<2x128xf32>
    %60 = arith.divf %58, %59 : vector<2x128xf32>
    %61 = math.tanh %55 : vector<2x128xf32>
    %62 = vector.extract_strided_slice %60 {offsets = [0, 0], sizes = [2, 32], strides = [1, 1]} : vector<2x128xf32> to vector<2x32xf32>
    %63 = vector.extract_strided_slice %60 {offsets = [0, 32], sizes = [2, 32], strides = [1, 1]} : vector<2x128xf32> to vector<2x32xf32>
    %64 = vector.extract_strided_slice %61 {offsets = [0, 64], sizes = [2, 32], strides = [1, 1]} : vector<2x128xf32> to vector<2x32xf32>
    %65 = vector.extract_strided_slice %60 {offsets = [0, 96], sizes = [2, 32], strides = [1, 1]} : vector<2x128xf32> to vector<2x32xf32>
    %66 = arith.mulf %63, %49 : vector<2x32xf32>
    %67 = arith.mulf %62, %64 : vector<2x32xf32>
    %68 = arith.addf %66, %67 : vector<2x32xf32>
    %69 = math.tanh %68 : vector<2x32xf32>
    %70 = arith.mulf %65, %69 : vector<2x32xf32>
    %71 = vector.extract_strided_slice %11 {offsets = [0, 3, 0], sizes = [2, 1, 128], strides = [1, 1, 1]} : vector<2x8x128xf32> to vector<2x1x128xf32>
    %72 = vector.shape_cast %71 : vector<2x1x128xf32> to vector<2x128xf32>
    %cst_17 = arith.constant dense<0.000000e+00> : vector<2x128xf32>
    %73 = tpu.matmul %70, %3, %cst_17 {dimension_numbers = #tpu.dot_dimension_numbers<[1], [0], [0], [1], [0, 0, 1, 1], [], []>} : vector<2x32xf32>, vector<32x128xf32>, vector<2x128xf32> -> vector<2x128xf32>
    %74 = arith.addf %72, %73 : vector<2x128xf32>
    %75 = arith.negf %74 : vector<2x128xf32>
    %76 = math.exp %75 : vector<2x128xf32>
    %cst_18 = arith.constant 1.000000e+00 : f32
    %77 = vector.broadcast %cst_18 : f32 to vector<2x128xf32>
    %78 = arith.addf %77, %76 : vector<2x128xf32>
    %79 = arith.divf %77, %78 : vector<2x128xf32>
    %80 = math.tanh %74 : vector<2x128xf32>
    %81 = vector.extract_strided_slice %79 {offsets = [0, 0], sizes = [2, 32], strides = [1, 1]} : vector<2x128xf32> to vector<2x32xf32>
    %82 = vector.extract_strided_slice %79 {offsets = [0, 32], sizes = [2, 32], strides = [1, 1]} : vector<2x128xf32> to vector<2x32xf32>
    %83 = vector.extract_strided_slice %80 {offsets = [0, 64], sizes = [2, 32], strides = [1, 1]} : vector<2x128xf32> to vector<2x32xf32>
    %84 = vector.extract_strided_slice %79 {offsets = [0, 96], sizes = [2, 32], strides = [1, 1]} : vector<2x128xf32> to vector<2x32xf32>
    %85 = arith.mulf %82, %68 : vector<2x32xf32>
    %86 = arith.mulf %81, %83 : vector<2x32xf32>
    %87 = arith.addf %85, %86 : vector<2x32xf32>
    %88 = math.tanh %87 : vector<2x32xf32>
    %89 = arith.mulf %84, %88 : vector<2x32xf32>
    %90 = vector.extract_strided_slice %11 {offsets = [0, 4, 0], sizes = [2, 1, 128], strides = [1, 1, 1]} : vector<2x8x128xf32> to vector<2x1x128xf32>
    %91 = vector.shape_cast %90 : vector<2x1x128xf32> to vector<2x128xf32>
    %cst_19 = arith.constant dense<0.000000e+00> : vector<2x128xf32>
    %92 = tpu.matmul %89, %3, %cst_19 {dimension_numbers = #tpu.dot_dimension_numbers<[1], [0], [0], [1], [0, 0, 1, 1], [], []>} : vector<2x32xf32>, vector<32x128xf32>, vector<2x128xf32> -> vector<2x128xf32>
    %93 = arith.addf %91, %92 : vector<2x128xf32>
    %94 = arith.negf %93 : vector<2x128xf32>
    %95 = math.exp %94 : vector<2x128xf32>
    %cst_20 = arith.constant 1.000000e+00 : f32
    %96 = vector.broadcast %cst_20 : f32 to vector<2x128xf32>
    %97 = arith.addf %96, %95 : vector<2x128xf32>
    %98 = arith.divf %96, %97 : vector<2x128xf32>
    %99 = math.tanh %93 : vector<2x128xf32>
    %100 = vector.extract_strided_slice %98 {offsets = [0, 0], sizes = [2, 32], strides = [1, 1]} : vector<2x128xf32> to vector<2x32xf32>
    %101 = vector.extract_strided_slice %98 {offsets = [0, 32], sizes = [2, 32], strides = [1, 1]} : vector<2x128xf32> to vector<2x32xf32>
    %102 = vector.extract_strided_slice %99 {offsets = [0, 64], sizes = [2, 32], strides = [1, 1]} : vector<2x128xf32> to vector<2x32xf32>
    %103 = vector.extract_strided_slice %98 {offsets = [0, 96], sizes = [2, 32], strides = [1, 1]} : vector<2x128xf32> to vector<2x32xf32>
    %104 = arith.mulf %101, %87 : vector<2x32xf32>
    %105 = arith.mulf %100, %102 : vector<2x32xf32>
    %106 = arith.addf %104, %105 : vector<2x32xf32>
    %107 = math.tanh %106 : vector<2x32xf32>
    %108 = arith.mulf %103, %107 : vector<2x32xf32>
    %109 = vector.extract_strided_slice %11 {offsets = [0, 5, 0], sizes = [2, 1, 128], strides = [1, 1, 1]} : vector<2x8x128xf32> to vector<2x1x128xf32>
    %110 = vector.shape_cast %109 : vector<2x1x128xf32> to vector<2x128xf32>
    %cst_21 = arith.constant dense<0.000000e+00> : vector<2x128xf32>
    %111 = tpu.matmul %108, %3, %cst_21 {dimension_numbers = #tpu.dot_dimension_numbers<[1], [0], [0], [1], [0, 0, 1, 1], [], []>} : vector<2x32xf32>, vector<32x128xf32>, vector<2x128xf32> -> vector<2x128xf32>
    %112 = arith.addf %110, %111 : vector<2x128xf32>
    %113 = arith.negf %112 : vector<2x128xf32>
    %114 = math.exp %113 : vector<2x128xf32>
    %cst_22 = arith.constant 1.000000e+00 : f32
    %115 = vector.broadcast %cst_22 : f32 to vector<2x128xf32>
    %116 = arith.addf %115, %114 : vector<2x128xf32>
    %117 = arith.divf %115, %116 : vector<2x128xf32>
    %118 = math.tanh %112 : vector<2x128xf32>
    %119 = vector.extract_strided_slice %117 {offsets = [0, 0], sizes = [2, 32], strides = [1, 1]} : vector<2x128xf32> to vector<2x32xf32>
    %120 = vector.extract_strided_slice %117 {offsets = [0, 32], sizes = [2, 32], strides = [1, 1]} : vector<2x128xf32> to vector<2x32xf32>
    %121 = vector.extract_strided_slice %118 {offsets = [0, 64], sizes = [2, 32], strides = [1, 1]} : vector<2x128xf32> to vector<2x32xf32>
    %122 = vector.extract_strided_slice %117 {offsets = [0, 96], sizes = [2, 32], strides = [1, 1]} : vector<2x128xf32> to vector<2x32xf32>
    %123 = arith.mulf %120, %106 : vector<2x32xf32>
    %124 = arith.mulf %119, %121 : vector<2x32xf32>
    %125 = arith.addf %123, %124 : vector<2x32xf32>
    %126 = math.tanh %125 : vector<2x32xf32>
    %127 = arith.mulf %122, %126 : vector<2x32xf32>
    %128 = vector.extract_strided_slice %11 {offsets = [0, 6, 0], sizes = [2, 1, 128], strides = [1, 1, 1]} : vector<2x8x128xf32> to vector<2x1x128xf32>
    %129 = vector.shape_cast %128 : vector<2x1x128xf32> to vector<2x128xf32>
    %cst_23 = arith.constant dense<0.000000e+00> : vector<2x128xf32>
    %130 = tpu.matmul %127, %3, %cst_23 {dimension_numbers = #tpu.dot_dimension_numbers<[1], [0], [0], [1], [0, 0, 1, 1], [], []>} : vector<2x32xf32>, vector<32x128xf32>, vector<2x128xf32> -> vector<2x128xf32>
    %131 = arith.addf %129, %130 : vector<2x128xf32>
    %132 = arith.negf %131 : vector<2x128xf32>
    %133 = math.exp %132 : vector<2x128xf32>
    %cst_24 = arith.constant 1.000000e+00 : f32
    %134 = vector.broadcast %cst_24 : f32 to vector<2x128xf32>
    %135 = arith.addf %134, %133 : vector<2x128xf32>
    %136 = arith.divf %134, %135 : vector<2x128xf32>
    %137 = math.tanh %131 : vector<2x128xf32>
    %138 = vector.extract_strided_slice %136 {offsets = [0, 0], sizes = [2, 32], strides = [1, 1]} : vector<2x128xf32> to vector<2x32xf32>
    %139 = vector.extract_strided_slice %136 {offsets = [0, 32], sizes = [2, 32], strides = [1, 1]} : vector<2x128xf32> to vector<2x32xf32>
    %140 = vector.extract_strided_slice %137 {offsets = [0, 64], sizes = [2, 32], strides = [1, 1]} : vector<2x128xf32> to vector<2x32xf32>
    %141 = vector.extract_strided_slice %136 {offsets = [0, 96], sizes = [2, 32], strides = [1, 1]} : vector<2x128xf32> to vector<2x32xf32>
    %142 = arith.mulf %139, %125 : vector<2x32xf32>
    %143 = arith.mulf %138, %140 : vector<2x32xf32>
    %144 = arith.addf %142, %143 : vector<2x32xf32>
    %145 = math.tanh %144 : vector<2x32xf32>
    %146 = arith.mulf %141, %145 : vector<2x32xf32>
    %147 = vector.extract_strided_slice %11 {offsets = [0, 7, 0], sizes = [2, 1, 128], strides = [1, 1, 1]} : vector<2x8x128xf32> to vector<2x1x128xf32>
    %148 = vector.shape_cast %147 : vector<2x1x128xf32> to vector<2x128xf32>
    %cst_25 = arith.constant dense<0.000000e+00> : vector<2x128xf32>
    %149 = tpu.matmul %146, %3, %cst_25 {dimension_numbers = #tpu.dot_dimension_numbers<[1], [0], [0], [1], [0, 0, 1, 1], [], []>} : vector<2x32xf32>, vector<32x128xf32>, vector<2x128xf32> -> vector<2x128xf32>
    %150 = arith.addf %148, %149 : vector<2x128xf32>
    %151 = arith.negf %150 : vector<2x128xf32>
    %152 = math.exp %151 : vector<2x128xf32>
    %cst_26 = arith.constant 1.000000e+00 : f32
    %153 = vector.broadcast %cst_26 : f32 to vector<2x128xf32>
    %154 = arith.addf %153, %152 : vector<2x128xf32>
    %155 = arith.divf %153, %154 : vector<2x128xf32>
    %156 = math.tanh %150 : vector<2x128xf32>
    %157 = vector.extract_strided_slice %155 {offsets = [0, 0], sizes = [2, 32], strides = [1, 1]} : vector<2x128xf32> to vector<2x32xf32>
    %158 = vector.extract_strided_slice %155 {offsets = [0, 32], sizes = [2, 32], strides = [1, 1]} : vector<2x128xf32> to vector<2x32xf32>
    %159 = vector.extract_strided_slice %156 {offsets = [0, 64], sizes = [2, 32], strides = [1, 1]} : vector<2x128xf32> to vector<2x32xf32>
    %160 = vector.extract_strided_slice %155 {offsets = [0, 96], sizes = [2, 32], strides = [1, 1]} : vector<2x128xf32> to vector<2x32xf32>
    %161 = arith.mulf %158, %144 : vector<2x32xf32>
    %162 = arith.mulf %157, %159 : vector<2x32xf32>
    %163 = arith.addf %161, %162 : vector<2x32xf32>
    %164 = math.tanh %163 : vector<2x32xf32>
    %165 = arith.mulf %160, %164 : vector<2x32xf32>
    %166 = tpu.concatenate %32, %51, %70, %89, %108, %127, %146, %165 in 1 : vector<2x32xf32>, vector<2x32xf32>, vector<2x32xf32>, vector<2x32xf32>, vector<2x32xf32>, vector<2x32xf32>, vector<2x32xf32>, vector<2x32xf32> -> vector<2x256xf32>
    %c0_27 = arith.constant 0 : index
    %c0_28 = arith.constant 0 : index
    %167 = vector.load %arg5[%c0_27, %c0_28] : memref<2x256xf32, #tpu.memory_space<vmem>>, vector<2x256xf32>
    tpu.vector_store %arg5[%c0_27, %c0_28], %166 {strides = array<i32>} : memref<2x256xf32, #tpu.memory_space<vmem>>, vector<2x256xf32>,
    %c0_29 = arith.constant 0 : index
    %c0_30 = arith.constant 0 : index
    %168 = vector.load %arg6[%c0_29, %c0_30] : memref<2x32xf32, #tpu.memory_space<vmem>>, vector<2x32xf32>
    tpu.vector_store %arg6[%c0_29, %c0_30], %165 {strides = array<i32>} : memref<2x32xf32, #tpu.memory_space<vmem>>, vector<2x32xf32>,
    %c0_31 = arith.constant 0 : index
    %c0_32 = arith.constant 0 : index
    %169 = vector.load %arg7[%c0_31, %c0_32] : memref<2x32xf32, #tpu.memory_space<vmem>>, vector<2x32xf32>
    tpu.vector_store %arg7[%c0_31, %c0_32], %163 {strides = array<i32>} : memref<2x32xf32, #tpu.memory_space<vmem>>, vector<2x32xf32>,
    return
  }
}

</mosaic_0001>

<bundles_post_ra>
// kernel: encoder_forward.1
= control target key start
LH: loop header
LB: loop body
LE: loop exit
PB: predicated region body
PF: predicated region fallthrough
CT: control target
= control target key end

     0   :  { %13 = vsyncpa [#allocation3], 0  ;;  %vm68_vm0 = vcmask 64512   ;;  %vm198_vm1 = vcmask 261120   ;;  %v2574_v3 = vmov 0.0|0.0   ;;  %vm2575_vm4 = vmmov 0   ;;  %s3254_s0 = inlined_call_operand.vmem [shape: f32[16,8], index: 0, kind: input, shape index: {}]   ;;  %s3255_s1 = inlined_call_operand.vmem [shape: f32[128,8], index: 1, kind: input, shape index: {}]   ;;  %s3256_s2 = inlined_call_operand.vmem [shape: f32[128,32], index: 2, kind: input, shape index: {}]   ;;  %s3257_s3 = inlined_call_operand.vmem [shape: f32[1,128], index: 3, kind: input, shape index: {}]   ;;  %s3258_s4 = inlined_call_operand.vmem [shape: f32[1,128], index: 4, kind: input, shape index: {}]   ;;  %s3259_s5 = inlined_call_operand.vmem [shape: f32[2,256], index: 5, kind: output, shape index: {0}]   ;;  %s3260_s6 = inlined_call_operand.hbm [shape: f32[2,32], index: 6, kind: output, shape index: {1}]   ;;  %s3261_s7 = inlined_call_operand.hbm [shape: f32[2,32], index: 7, kind: output, shape index: {2}]  }
   0x1   :  { %v25_v0 = vld [vmem:[%s3255_s1] sm:$0xff]  ;;  %v26_v1 = vld [vmem:[%s3255_s1 + $0x8] sm:$0xff]  ;;  %2134 = vmatprep.subr.bf16.mxu1 %v2574_v3  ;;  %vm2634_vm2 = vmpackc.low %vm68_vm0, %vm68_vm0  ;;  %v2576_v11 = vmov 0.0  }
   0x2   :  { %v41_v2 = vld [vmem:[%s3256_s2] sm:$0xff]  ;;  %v2086_v4 = vpack.c.bf16 %v26_v1, %v25_v0  ;;  %v42_v6 = vld [vmem:[%s3256_s2 + $0x8] sm:$0xff]  ;;  %v27_v7 = vld [vmem:[%s3255_s1 + $0x10] sm:$0xff]  ;;  %1838 = vmatprep.mubr.msk.f32.mxu1 %vm2575_vm4, %v2576_v11 }
   0x3   :  { %v2644_v8 = vpack.c.bf16 %v42_v6, %v41_v2  ;;  %vm2648_vm3 = vmpackc.low %vm198_vm1, %vm198_vm1  ;;  %v28_v10 = vld [vmem:[%s3255_s1 + $0x18] sm:$0xff]  ;;  %v43_v13 = vld [vmem:[%s3256_s2 + $0x10] sm:$0xff] }
   0x4   :  { %2088 = vmatprep.subr.msk.bf16.mxu0 %vm2634_vm2, %v2086_v4  ;;  %v2092_v12 = vpack.c.bf16 %v28_v10, %v27_v7  ;;  %v44_v14 = vld [vmem:[%s3256_s2 + $0x18] sm:$0xff]  ;;  %v29_v15 = vld [vmem:[%s3255_s1 + $0x20] sm:$0xff]  ;;  %v30_v16 = vld [vmem:[%s3255_s1 + $0x28] sm:$0xff] }
   0x5   :  { %2137 = vmatpush3.bf16.xpose.msk.msra.mxu1 %vm2648_vm3, %v2644_v8  ;;  %2091 = vmatpush3.bf16.xpose.msk.msra.mxu0 %vm2634_vm2, %v2086_v4  ;;  %v2679_v17 = vpack.c.bf16 %v44_v14, %v43_v13  ;;  %v2098_v18 = vpack.c.bf16 %v30_v16, %v29_v15  ;;  %v60_v19 = vld [vmem:[%s3254_s0] sm:$0xff] }
   0x6   :  { %2138 = vmatprep.subr.bf16.mxu1 %v2574_v3  ;;  %2094 = vmatprep.subr.msk.bf16.mxu0 %vm2634_vm2, %v2092_v12 }
   0xd   :  { %2141 = vmatpush3.bf16.xpose.msk.msra.mxu1 %vm2648_vm3, %v2679_v17  ;;  %2097 = vmatpush3.bf16.xpose.msk.msra.mxu0 %vm2634_vm2, %v2092_v12 }
   0xe   :  { %14 = vsyncpa [#allocation5], 0  ;;  %2142 = vmatprep.subr.bf16.mxu1 %v2574_v3  ;;  %2100 = vmatprep.subr.msk.bf16.mxu0 %vm2634_vm2, %v2098_v18  ;;  %v45_v20 = vld [vmem:[%s3256_s2 + $0x20] sm:$0xff]  ;;  %v46_v21 = vld [vmem:[%s3256_s2 + $0x28] sm:$0xff]  ;;  %v63_v54 = vlaneseq  ;;  %vm377_vm5 = vcmask 1041409   ;;  %s2579_s24 = smov 96  }
   0xf   :  { %v31_v22 = vld [vmem:[%s3255_s1 + $0x30] sm:$0xff]  ;;  %v32_v23 = vld [vmem:[%s3255_s1 + $0x38] sm:$0xff]  ;;  %1803 = vmatprep.mubr.msk.f32.mxu0 %vm68_vm0, %v60_v19  ;;  %v2705_v24 = vpack.c.bf16 %v46_v21, %v45_v20  ;;  %v33_v28 = vld [vmem:[%s3255_s1 + $0x40] sm:$0xff]  ;;  %vm1374_vm6 = vcmask 523264   ;;  %vm1376_vm7 = vcmask 785408   ;;  %vm1400_vm8 = vcmask 261127  }
  0x10   :  { %v2104_v25 = vpack.c.bf16 %v32_v23, %v31_v22  ;;  %v47_v26 = vld [vmem:[%s3256_s2 + $0x30] sm:$0xff]  ;;  %v48_v27 = vld [vmem:[%s3256_s2 + $0x38] sm:$0xff]  ;;  %v34_v29 = vld [vmem:[%s3255_s1 + $0x48] sm:$0xff]  ;;  %v64_v55 = vshrl.u32 %v63_v54, 7  ;;  %s2580_s27 = smov [#allocation2]   ;;  %vm1402_vm9 = vcmask 253952  }
  0x11   :  { %v2727_v30 = vpack.c.bf16 %v48_v27, %v47_v26  ;;  %v2110_v31 = vpack.c.bf16 %v34_v29, %v33_v28  ;;  %v49_v32 = vld [vmem:[%s3256_s2 + $0x40] sm:$0xff]  ;;  %v50_v33 = vld [vmem:[%s3256_s2 + $0x48] sm:$0xff]  ;;  %v35_v34 = vld [vmem:[%s3255_s1 + $0x50] sm:$0xff]  ;;  %s1423_s28 = sshll.u32 %s2580_s27, 4  ;;  %s2581_s29 = smov [#allocation4]   ;;  %s1424_s28 = int_to_ptr.vmem [resolvable:$true] %s1423_s28 }
  0x12   :  { %v36_v35 = vld [vmem:[%s3255_s1 + $0x58] sm:$0xff]  ;;  %v2749_v36 = vpack.c.bf16 %v50_v33, %v49_v32  ;;  %v51_v38 = vld [vmem:[%s3256_s2 + $0x50] sm:$0xff]  ;;  %v37_v40 = vld [vmem:[%s3255_s1 + $0x60] sm:$0xff]  ;;  %v65_v59 = vsub.s32 0, %v64_v55  ;;  %s1433_s30 = sshll.u32 %s2581_s29, 4  ;;  %s2526_s8 = scalar_lea.vmem %s1424_s28, 32  ;;  %s1434_s30 = int_to_ptr.vmem [resolvable:$true] %s1433_s30 }
  0x13   :  { %v2116_v37 = vpack.c.bf16 %v36_v35, %v35_v34  ;;  %v52_v39 = vld [vmem:[%s3256_s2 + $0x58] sm:$0xff]  ;;  %v38_v41 = vld [vmem:[%s3255_s1 + $0x68] sm:$0xff]  ;;  %v53_v44 = vld [vmem:[%s3256_s2 + $0x60] sm:$0xff]  ;;  %p2527_p0 = scmp.ne.s32.totalorder %s1424_s28, %s2526_s8  ;;  %p2531_p1 = scmp.lt.s32.totalorder %s1424_s28, %s1424_s28 }
  0x14   :  { %v2771_v42 = vpack.c.bf16 %v52_v39, %v51_v38  ;;  %v2122_v43 = vpack.c.bf16 %v38_v41, %v37_v40  ;;  %v54_v45 = vld [vmem:[%s3256_s2 + $0x68] sm:$0xff]  ;;  %v39_v46 = vld [vmem:[%s3255_s1 + $0x70] sm:$0xff]  ;;  %v40_v47 = vld [vmem:[%s3255_s1 + $0x78] sm:$0xff]  ;;  %p2532_p2 = scmp.lt.s32.totalorder %s2526_s8, %s2526_s8 }
  0x15   :  { %2145 = vmatpush3.bf16.xpose.msk.msra.mxu1 %vm2648_vm3, %v2705_v24  ;;  %2103 = vmatpush3.bf16.xpose.msk.msra.mxu0 %vm2634_vm2, %v2098_v18  ;;  %v2793_v48 = vpack.c.bf16 %v54_v45, %v53_v44  ;;  %v2128_v49 = vpack.c.bf16 %v40_v47, %v39_v46  ;;  %v55_v50 = vld [vmem:[%s3256_s2 + $0x70] sm:$0xff]  ;;  %v56_v51 = vld [vmem:[%s3256_s2 + $0x78] sm:$0xff]  ;;  %v61_v53 = vld [vmem:[%s3254_s0 + $0x8] sm:$0xff] }
  0x16   :  { %2146 = vmatprep.subr.bf16.mxu1 %v2574_v3  ;;  %2106 = vmatprep.subr.msk.bf16.mxu0 %vm2634_vm2, %v2104_v25  ;;  %v2809_v52 = vpack.c.bf16 %v56_v51, %v55_v50  ;;  %v57_v56 = vld [vmem:[%s3257_s3] sm:$0x1]  ;;  %s2577_s3 = smov 64   ;;  %p2533_p3 = por %p2532_p2, %p2531_p1 }
  0x17   :  { %v58_v57 = vld [vmem:[%s3258_s4] sm:$0x1]  ;;  %s2578_s4 = smov 32  }
  0x18   :  { %v59_v58 = vadd.f32 %v58_v57, %v57_v56  ;;  %p2534_p4 = pnand %p2533_p3, %p2527_p0 }
  0x1a   :  { %v66_v60 = vrot.slane %v59_v58, %v65_v59 }
  0x1d   :  { %2149 = vmatpush3.bf16.xpose.msk.msra.mxu1 %vm2648_vm3, %v2727_v30  ;;  %2109 = vmatpush3.bf16.xpose.msk.msra.mxu0 %vm2634_vm2, %v2104_v25 }
  0x1e   :  { %2150 = vmatprep.subr.bf16.mxu1 %v2574_v3  ;;  %2112 = vmatprep.subr.msk.bf16.mxu0 %vm2634_vm2, %v2110_v31 }
  0x25   :  { %2153 = vmatpush3.bf16.xpose.msk.msra.mxu1 %vm2648_vm3, %v2749_v36  ;;  %2115 = vmatpush3.bf16.xpose.msk.msra.mxu0 %vm2634_vm2, %v2110_v31 }
  0x26   :  { %2154 = vmatprep.subr.bf16.mxu1 %v2574_v3  ;;  %2118 = vmatprep.subr.msk.bf16.mxu0 %vm2634_vm2, %v2116_v37 }
  0x2d   :  { %2157 = vmatpush3.bf16.xpose.msk.msra.mxu1 %vm2648_vm3, %v2771_v42  ;;  %2121 = vmatpush3.bf16.xpose.msk.msra.mxu0 %vm2634_vm2, %v2116_v37 }
  0x2e   :  { %2158 = vmatprep.subr.bf16.mxu1 %v2574_v3  ;;  %2124 = vmatprep.subr.msk.bf16.mxu0 %vm2634_vm2, %v2122_v43 }
  0x35   :  { %2161 = vmatpush3.bf16.xpose.msk.msra.mxu1 %vm2648_vm3, %v2793_v48  ;;  %2127 = vmatpush3.bf16.xpose.msk.msra.mxu0 %vm2634_vm2, %v2122_v43 }
  0x36   :  { %2162 = vmatprep.subr.bf16.mxu1 %v2574_v3  ;;  %2130 = vmatprep.subr.msk.bf16.mxu0 %vm2634_vm2, %v2128_v49 }
  0x3d   :  { %2165 = vmatpush3.bf16.xpose.msk.msra.mxu1 %vm2648_vm3, %v2809_v52  ;;  %2133 = vmatpush3.bf16.xpose.msk.msra.mxu0 %vm2634_vm2, %v2128_v49 }
  0x3e   :  { %2166 = vmatprep.subr.bf16.mxu0 %v2574_v3  ;;  %2198 = vmatprep.subr.bf16.mxu1 %v2574_v3 }
  0x44   :  { %1839 = vmatmul.mubr.f32.vlgmr.msra.gmra.mrb[0].mxu1 %v2576_v11  ;;  %1804 = vmatmul.mubr.msk.f32.vlgmr.msra.gmra.mrb[0].mxu0 %vm68_vm0, %v61_v53 }
  0x45   :  { %2169 = vmatpush3.bf16.xpose.msk.msra.mxu0 %vm2648_vm3, %v2644_v8  ;;  %1873 = vmatprep.mubr.msk.f32.mxu0 %vm2575_vm4, %v2576_v11 }
  0x46   :  { %2170 = vmatprep.subr.bf16.mxu0 %v2574_v3  ;;  %2201 = vmatpush3.bf16.xpose.msk.msra.mxu1 %vm2648_vm3, %v2644_v8 }
  0x47   :  { %2202 = vmatprep.subr.bf16.mxu1 %v2574_v3  ;;  %1908 = vmatprep.mubr.msk.f32.mxu1 %vm2575_vm4, %v2576_v11 }
  0x4d   :  { %2173 = vmatpush3.bf16.xpose.msk.msra.mxu0 %vm2648_vm3, %v2679_v17 }
  0x4e   :  { %2174 = vmatprep.subr.bf16.mxu0 %v2574_v3  ;;  %2205 = vmatpush3.bf16.xpose.msk.msra.mxu1 %vm2648_vm3, %v2679_v17 }
  0x4f   :  { %2206 = vmatprep.subr.bf16.mxu1 %v2574_v3 }
  0x55   :  { %2177 = vmatpush3.bf16.xpose.msk.msra.mxu0 %vm2648_vm3, %v2705_v24 }
  0x56   :  { %2178 = vmatprep.subr.bf16.mxu0 %v2574_v3  ;;  %2209 = vmatpush3.bf16.xpose.msk.msra.mxu1 %vm2648_vm3, %v2705_v24 }
  0x57   :  { %2210 = vmatprep.subr.bf16.mxu1 %v2574_v3 }
  0x5d   :  { %2181 = vmatpush3.bf16.xpose.msk.msra.mxu0 %vm2648_vm3, %v2727_v30 }
  0x5e   :  { %2182 = vmatprep.subr.bf16.mxu0 %v2574_v3  ;;  %2213 = vmatpush3.bf16.xpose.msk.msra.mxu1 %vm2648_vm3, %v2727_v30 }
  0x5f   :  { %2214 = vmatprep.subr.bf16.mxu1 %v2574_v3 }
  0x65   :  { %2185 = vmatpush3.bf16.xpose.msk.msra.mxu0 %vm2648_vm3, %v2749_v36 }
  0x66   :  { %2186 = vmatprep.subr.bf16.mxu0 %v2574_v3  ;;  %2217 = vmatpush3.bf16.xpose.msk.msra.mxu1 %vm2648_vm3, %v2749_v36 }
  0x67   :  { %2218 = vmatprep.subr.bf16.mxu1 %v2574_v3 }
  0x6d   :  { %2189 = vmatpush3.bf16.xpose.msk.msra.mxu0 %vm2648_vm3, %v2771_v42 }
  0x6e   :  { %2190 = vmatprep.subr.bf16.mxu0 %v2574_v3  ;;  %2221 = vmatpush3.bf16.xpose.msk.msra.mxu1 %vm2648_vm3, %v2771_v42 }
  0x6f   :  { %2222 = vmatprep.subr.bf16.mxu1 %v2574_v3 }
  0x75   :  { %2193 = vmatpush3.bf16.xpose.msk.msra.mxu0 %vm2648_vm3, %v2793_v48 }
  0x76   :  { %2194 = vmatprep.subr.bf16.mxu0 %v2574_v3  ;;  %2225 = vmatpush3.bf16.xpose.msk.msra.mxu1 %vm2648_vm3, %v2793_v48 }
  0x77   :  { %2226 = vmatprep.subr.bf16.mxu1 %v2574_v3 }
  0x7d   :  { %2197 = vmatpush3.bf16.xpose.msk.msra.mxu0 %vm2648_vm3, %v2809_v52 }
  0x7e   :  { %2229 = vmatpush3.bf16.xpose.msk.msra.mxu1 %vm2648_vm3, %v2809_v52  ;;  %2230 = vmatprep.subr.bf16.mxu0 %v2574_v3 }
  0x7f   :  { %2262 = vmatprep.subr.bf16.mxu1 %v2574_v3 }
 0x117   :  { %v316_v61 = vpop.f32.mrb[0].mxu1  ;;  %v1805_v62 = vpop.f32.mrb[0].mxu0 }
 0x118   :  { %v321_v63 = vrot.slane %v316_v61, 1  ;;  %v2897_v0 = vadd.f32 %v1805_v62, %v66_v60  ;;  %v1840_v1 = vpop.f32.mrb[1].mxu1  ;;  %v189_v2 = vpop.f32.mrb[1].mxu0 }
 0x119   :  { %v2899_v4 = vadd.f32 %v189_v2, %v66_v60 }
 0x11a   :  { %v325_v5 = vadd.f32 %v321_v63, %v2897_v0 }
 0x11b   :  { %v324_v6 = vadd.f32 %v316_v61, %v2899_v4 }
 0x11c   :  { %2398 = vtanh.f32 %v325_v5  ;;  %v1482_v12 = vmul.f32 -1.442695, %v325_v5 }
 0x11d   :  { %2400 = vtanh.f32 %v324_v6  ;;  %v1481_v13 = vmul.f32 -1.442695, %v324_v6 }
 0x11e   :  { %2402 = vpow2.f32 %v1482_v12 }
 0x11f   :  { %2404 = vpow2.f32 %v1481_v13 }
 0x126   :  { %v2399_v7 = vpop.eup %2398 }
 0x127   :  { %346 = vrot.lane.b32.xlu0 %v2399_v7, %s2577_s3  ;;  %v2401_v10 = vpop.eup %2400 }
 0x128   :  { %v2403_v14 = vpop.eup %2402 }
 0x129   :  { %v333_v15 = vadd.f32 1.0, %v2403_v14  ;;  %v2405_v16 = vpop.eup %2404 }
 0x12a   :  { %v332_v18 = vadd.f32 1.0, %v2405_v16 }
 0x12b   :  { %344 = vrot.lane.b32.xlu0 %v2401_v10, %s2577_s3  ;;  %2406 = vrcp.f32 %v333_v15 }
 0x12c   :  { %2408 = vrcp.f32 %v332_v18 }
 0x135   :  { %v2407_v19 = vpop.eup %2406 }
 0x136   :  { %v2409_v22 = vpop.eup %2408  ;;  %v341_v26 = vmul.f32 0.0, %v2407_v19 }
 0x137   :  { %v340_v29 = vmul.f32 0.0, %v2409_v22 }
 0x199   :  { %v347_v20 = vpop.permute.xlu0 %346 }
 0x19a   :  { %v351_v21 = vmul.f32 %v2407_v19, %v347_v20 }
 0x19c   :  { %356 = vrot.lane.b32.xlu1 %v351_v21, %s2578_s4 }
 0x19d   :  { %v345_v23 = vpop.permute.xlu0 %344 }
 0x19e   :  { %v350_v25 = vmul.f32 %v2409_v22, %v345_v23 }
 0x1a0   :  { %354 = vrot.lane.b32.xlu1 %v350_v25, %s2578_s4 }
 0x20e   :  { %v357_v27 = vpop.permute.xlu1 %356 }
 0x20f   :  { %v2907_v28 = vadd.f32 %v357_v27, %v341_v26 }
 0x211   :  { %2410 = vtanh.f32 %v2907_v28  ;;  %v476_v2 = vrot.slane %v2907_v28, 7 }
 0x212   :  { %v355_v31 = vpop.permute.xlu1 %354 }
 0x213   :  { %v2910_v32 = vadd.f32 %v355_v31, %v340_v29 }
 0x215   :  { %2412 = vtanh.f32 %v2910_v32  ;;  %v475_v6 = vrot.slane %v2910_v32, 7 }
 0x21b   :  { %v2411_v33 = vpop.eup %2410 }
 0x21c   :  { %368 = vrot.lane.b32.xlu0 %v2411_v33, %s2577_s3 }
 0x21f   :  { %v2413_v34 = vpop.eup %2412 }
 0x220   :  { %366 = vrot.lane.b32.xlu1 %v2413_v34, %s2577_s3 }
 0x28e   :  { %v369_v35 = vpop.permute.xlu0 %368 }
 0x28f   :  { %v373_v37 = vmul.f32 %v2407_v19, %v369_v35 }
 0x291   :  { %v376_v39 = vrot.slane %v373_v37, 7 }
 0x292   :  { %v367_v38 = vpop.permute.xlu1 %366 }
 0x293   :  { %v372_v40 = vmul.f32 %v2409_v22, %v367_v38 }
 0x295   :  { %v378_v41 = vsel %vm377_vm5, %v376_v39, %v372_v40 }
 0x296   :  { %379 = vrot.lane.b32.xlu0 %v378_v41, %s2578_s4 }
 0x308   :  { %v2917_v43 = vpop.permute.xlu0 %379 }
 0x309   :  { %1874 = vmatmul.mubr.msk.f32.vlgmr.msra.gmra.mrb[2].mxu0 %vm198_vm1, %v2917_v43 }
 0x30a   :  { %2233 = vmatpush3.bf16.xpose.msk.msra.mxu0 %vm2648_vm3, %v2644_v8  ;;  %1943 = vmatprep.mubr.msk.f32.mxu0 %vm2575_vm4, %v2576_v11 }
 0x30b   :  { %2234 = vmatprep.subr.bf16.mxu0 %v2574_v3 }
 0x312   :  { %2237 = vmatpush3.bf16.xpose.msk.msra.mxu0 %vm2648_vm3, %v2679_v17 }
 0x313   :  { %2238 = vmatprep.subr.bf16.mxu0 %v2574_v3 }
 0x31a   :  { %2241 = vmatpush3.bf16.xpose.msk.msra.mxu0 %vm2648_vm3, %v2705_v24 }
 0x31b   :  { %2242 = vmatprep.subr.bf16.mxu0 %v2574_v3 }
 0x322   :  { %2245 = vmatpush3.bf16.xpose.msk.msra.mxu0 %vm2648_vm3, %v2727_v30 }
 0x323   :  { %2246 = vmatprep.subr.bf16.mxu0 %v2574_v3 }
 0x32a   :  { %2249 = vmatpush3.bf16.xpose.msk.msra.mxu0 %vm2648_vm3, %v2749_v36 }
 0x32b   :  { %2250 = vmatprep.subr.bf16.mxu0 %v2574_v3 }
 0x332   :  { %2253 = vmatpush3.bf16.xpose.msk.msra.mxu0 %vm2648_vm3, %v2771_v42 }
 0x333   :  { %2254 = vmatprep.subr.bf16.mxu0 %v2574_v3 }
 0x33a   :  { %2257 = vmatpush3.bf16.xpose.msk.msra.mxu0 %vm2648_vm3, %v2793_v48 }
 0x33b   :  { %2258 = vmatprep.subr.bf16.mxu0 %v2574_v3 }
 0x342   :  { %2261 = vmatpush3.bf16.xpose.msk.msra.mxu0 %vm2648_vm3, %v2809_v52 }
 0x343   :  { %2294 = vmatprep.subr.bf16.mxu0 %v2574_v3 }
 0x3dc   :  { %v449_v44 = vpop.f32.mrb[2].mxu0 }
 0x3dd   :  { %v454_v45 = vrot.slane %v449_v44, 7  ;;  %v458_v46 = vadd.f32 %v449_v44, %v2897_v0  ;;  %v1875_v47 = vpop.f32.mrb[3].mxu0 }
 0x3df   :  { %v457_v49 = vadd.f32 %v454_v45, %v2899_v4  ;;  %2414 = vtanh.f32 %v458_v46  ;;  %v1501_v53 = vmul.f32 -1.442695, %v458_v46 }
 0x3e1   :  { %2416 = vtanh.f32 %v457_v49  ;;  %v1500_v54 = vmul.f32 -1.442695, %v457_v49 }
 0x3e2   :  { %2418 = vpow2.f32 %v1501_v53 }
 0x3e3   :  { %2420 = vpow2.f32 %v1500_v54 }
 0x3e9   :  { %v2415_v50 = vpop.eup %2414 }
 0x3ea   :  { %485 = vrot.lane.b32.xlu0 %v2415_v50, %s2577_s3 }
 0x3eb   :  { %v2417_v51 = vpop.eup %2416 }
 0x3ec   :  { %483 = vrot.lane.b32.xlu1 %v2417_v51, %s2577_s3  ;;  %v2419_v55 = vpop.eup %2418 }
 0x3ed   :  { %v2421_v56 = vpop.eup %2420  ;;  %v466_v57 = vadd.f32 1.0, %v2419_v55 }
 0x3ee   :  { %v465_v58 = vadd.f32 1.0, %v2421_v56 }
 0x3ef   :  { %2422 = vrcp.f32 %v466_v57 }
 0x3f0   :  { %2424 = vrcp.f32 %v465_v58 }
 0x3f9   :  { %v2423_v59 = vpop.eup %2422 }
 0x3fa   :  { %v2425_v62 = vpop.eup %2424  ;;  %v480_v5 = vmul.f32 %v2423_v59, %v476_v2 }
 0x3fb   :  { %v479_v12 = vmul.f32 %v2425_v62, %v475_v6 }
 0x45c   :  { %v486_v60 = vpop.permute.xlu0 %485 }
 0x45d   :  { %v490_v61 = vmul.f32 %v2423_v59, %v486_v60 }
 0x45e   :  { %v484_v63 = vpop.permute.xlu1 %483 }
 0x45f   :  { %495 = vrot.lane.b32.xlu0 %v490_v61, %s2578_s4  ;;  %v489_v1 = vmul.f32 %v2425_v62, %v484_v63 }
 0x461   :  { %493 = vrot.lane.b32.xlu1 %v489_v1, %s2578_s4 }
 0x4d1   :  { %v496_v7 = vpop.permute.xlu0 %495 }
 0x4d2   :  { %v2963_v10 = vadd.f32 %v496_v7, %v480_v5 }
 0x4d3   :  { %v494_v13 = vpop.permute.xlu1 %493 }
 0x4d4   :  { %2426 = vtanh.f32 %v2963_v10  ;;  %v2966_v14 = vadd.f32 %v494_v13, %v479_v12  ;;  %v615_v53 = vrot.slane %v2963_v10, 7 }
 0x4d6   :  { %2428 = vtanh.f32 %v2966_v14  ;;  %v614_v51 = vrot.slane %v2966_v14, 7 }
 0x4de   :  { %v2427_v15 = vpop.eup %2426 }
 0x4df   :  { %507 = vrot.lane.b32.xlu0 %v2427_v15, %s2577_s3 }
 0x4e0   :  { %v2429_v16 = vpop.eup %2428 }
 0x4e1   :  { %505 = vrot.lane.b32.xlu1 %v2429_v16, %s2577_s3 }
 0x551   :  { %v508_v18 = vpop.permute.xlu0 %507 }
 0x552   :  { %v512_v21 = vmul.f32 %v2423_v59, %v508_v18 }
 0x553   :  { %v506_v19 = vpop.permute.xlu1 %505 }
 0x554   :  { %v511_v20 = vmul.f32 %v2425_v62, %v506_v19 }
 0x556   :  { %v515_v22 = vrot.slane %v511_v20, 1 }
 0x558   :  { %v2972_v23 = vsel %vm377_vm5, %v512_v21, %v515_v22 }
 0x559   :  { %517 = vrot.lane.b32.xlu1 %v2972_v23, %s2578_s4 }
 0x5cb   :  { %v518_v25 = vpop.permute.xlu1 %517 }
 0x5cc   :  { %1909 = vmatmul.mubr.msk.f32.vlgmr.msra.gmra.mrb[2].mxu1 %vm198_vm1, %v518_v25 }
 0x5cd   :  { %2265 = vmatpush3.bf16.xpose.msk.msra.mxu1 %vm2648_vm3, %v2644_v8  ;;  %1978 = vmatprep.mubr.msk.f32.mxu1 %vm2575_vm4, %v2576_v11 }
 0x5ce   :  { %2266 = vmatprep.subr.bf16.mxu1 %v2574_v3 }
 0x5d5   :  { %2269 = vmatpush3.bf16.xpose.msk.msra.mxu1 %vm2648_vm3, %v2679_v17 }
 0x5d6   :  { %2270 = vmatprep.subr.bf16.mxu1 %v2574_v3 }
 0x5dd   :  { %2273 = vmatpush3.bf16.xpose.msk.msra.mxu1 %vm2648_vm3, %v2705_v24 }
 0x5de   :  { %2274 = vmatprep.subr.bf16.mxu1 %v2574_v3 }
 0x5e5   :  { %2277 = vmatpush3.bf16.xpose.msk.msra.mxu1 %vm2648_vm3, %v2727_v30 }
 0x5e6   :  { %2278 = vmatprep.subr.bf16.mxu1 %v2574_v3 }
 0x5ed   :  { %2281 = vmatpush3.bf16.xpose.msk.msra.mxu1 %vm2648_vm3, %v2749_v36 }
 0x5ee   :  { %2282 = vmatprep.subr.bf16.mxu1 %v2574_v3 }
 0x5f5   :  { %2285 = vmatpush3.bf16.xpose.msk.msra.mxu1 %vm2648_vm3, %v2771_v42 }
 0x5f6   :  { %2286 = vmatprep.subr.bf16.mxu1 %v2574_v3 }
 0x5fd   :  { %2289 = vmatpush3.bf16.xpose.msk.msra.mxu1 %vm2648_vm3, %v2793_v48 }
 0x5fe   :  { %2290 = vmatprep.subr.bf16.mxu1 %v2574_v3 }
 0x605   :  { %2293 = vmatpush3.bf16.xpose.msk.msra.mxu1 %vm2648_vm3, %v2809_v52 }
 0x606   :  { %2326 = vmatprep.subr.bf16.mxu1 %v2574_v3 }
 0x69f   :  { %v587_v26 = vpop.f32.mrb[2].mxu1 }
 0x6a0   :  { %v592_v27 = vrot.slane %v587_v26, 6  ;;  %v593_v28 = vrot.slane %v587_v26, 7  ;;  %v1910_v29 = vpop.f32.mrb[3].mxu1 }
 0x6a2   :  { %v596_v31 = vadd.f32 %v592_v27, %v2899_v4  ;;  %v597_v32 = vadd.f32 %v593_v28, %v2897_v0 }
 0x6a4   :  { %2430 = vtanh.f32 %v596_v31  ;;  %v1519_v35 = vmul.f32 -1.442695, %v596_v31  ;;  %v1520_v37 = vmul.f32 -1.442695, %v597_v32 }
 0x6a5   :  { %2432 = vtanh.f32 %v597_v32 }
 0x6a6   :  { %2434 = vpow2.f32 %v1519_v35 }
 0x6a7   :  { %2436 = vpow2.f32 %v1520_v37 }
 0x6ae   :  { %v2431_v33 = vpop.eup %2430 }
 0x6af   :  { %v2433_v34 = vpop.eup %2432  ;;  %622 = vrot.lane.b32.xlu0 %v2431_v33, %s2577_s3 }
 0x6b0   :  { %624 = vrot.lane.b32.xlu1 %v2433_v34, %s2577_s3  ;;  %v2435_v38 = vpop.eup %2434 }
 0x6b1   :  { %v2437_v39 = vpop.eup %2436  ;;  %v604_v40 = vadd.f32 1.0, %v2435_v38 }
 0x6b2   :  { %v605_v41 = vadd.f32 1.0, %v2437_v39 }
 0x6b3   :  { %2438 = vrcp.f32 %v604_v40 }
 0x6b4   :  { %2440 = vrcp.f32 %v605_v41 }
 0x6bd   :  { %v2439_v44 = vpop.eup %2438 }
 0x6be   :  { %v2441_v46 = vpop.eup %2440  ;;  %v618_v54 = vmul.f32 %v2439_v44, %v614_v51 }
 0x6bf   :  { %v619_v55 = vmul.f32 %v2441_v46, %v615_v53 }
 0x721   :  { %v623_v45 = vpop.permute.xlu0 %622 }
 0x722   :  { %v625_v47 = vpop.permute.xlu1 %624  ;;  %v628_v49 = vmul.f32 %v2439_v44, %v623_v45 }
 0x723   :  { %v629_v50 = vmul.f32 %v2441_v46, %v625_v47 }
 0x724   :  { %632 = vrot.lane.b32.xlu0 %v628_v49, %s2578_s4 }
 0x725   :  { %634 = vrot.lane.b32.xlu1 %v629_v50, %s2578_s4 }
 0x796   :  { %v633_v56 = vpop.permute.xlu0 %632 }
 0x797   :  { %v635_v57 = vpop.permute.xlu1 %634  ;;  %v3019_v58 = vadd.f32 %v633_v56, %v618_v54 }
 0x798   :  { %v3021_v59 = vadd.f32 %v635_v57, %v619_v55 }
 0x799   :  { %2442 = vtanh.f32 %v3019_v58  ;;  %v754_v37 = vrot.slane %v3019_v58, 7 }
 0x79a   :  { %2444 = vtanh.f32 %v3021_v59  ;;  %v755_v38 = vrot.slane %v3021_v59, 7 }
 0x7a3   :  { %v2443_v60 = vpop.eup %2442 }
 0x7a4   :  { %v2445_v61 = vpop.eup %2444  ;;  %644 = vrot.lane.b32.xlu0 %v2443_v60, %s2577_s3 }
 0x7a5   :  { %646 = vrot.lane.b32.xlu1 %v2445_v61, %s2577_s3 }
 0x816   :  { %v645_v62 = vpop.permute.xlu0 %644 }
 0x817   :  { %v647_v63 = vpop.permute.xlu1 %646  ;;  %v650_v1 = vmul.f32 %v2439_v44, %v645_v62 }
 0x818   :  { %v651_v2 = vmul.f32 %v2441_v46, %v647_v63 }
 0x819   :  { %v654_v5 = vrot.slane %v650_v1, 2 }
 0x81a   :  { %v655_v6 = vrot.slane %v651_v2, 1 }
 0x81c   :  { %v3028_v7 = vsel %vm377_vm5, %v655_v6, %v654_v5 }
 0x81d   :  { %657 = vrot.lane.b32.xlu0 %v3028_v7, %s2578_s4 }
 0x88f   :  { %v658_v10 = vpop.permute.xlu0 %657 }
 0x890   :  { %1944 = vmatmul.mubr.msk.f32.vlgmr.msra.gmra.mrb[4].mxu0 %vm198_vm1, %v658_v10 }
 0x891   :  { %2297 = vmatpush3.bf16.xpose.msk.msra.mxu0 %vm2648_vm3, %v2644_v8  ;;  %2013 = vmatprep.mubr.msk.f32.mxu0 %vm2575_vm4, %v2576_v11 }
 0x892   :  { %2298 = vmatprep.subr.bf16.mxu0 %v2574_v3 }
 0x899   :  { %2301 = vmatpush3.bf16.xpose.msk.msra.mxu0 %vm2648_vm3, %v2679_v17 }
 0x89a   :  { %2302 = vmatprep.subr.bf16.mxu0 %v2574_v3 }
 0x8a1   :  { %2305 = vmatpush3.bf16.xpose.msk.msra.mxu0 %vm2648_vm3, %v2705_v24 }
 0x8a2   :  { %2306 = vmatprep.subr.bf16.mxu0 %v2574_v3 }
 0x8a9   :  { %2309 = vmatpush3.bf16.xpose.msk.msra.mxu0 %vm2648_vm3, %v2727_v30 }
 0x8aa   :  { %2310 = vmatprep.subr.bf16.mxu0 %v2574_v3 }
 0x8b1   :  { %2313 = vmatpush3.bf16.xpose.msk.msra.mxu0 %vm2648_vm3, %v2749_v36 }
 0x8b2   :  { %2314 = vmatprep.subr.bf16.mxu0 %v2574_v3 }
 0x8b9   :  { %2317 = vmatpush3.bf16.xpose.msk.msra.mxu0 %vm2648_vm3, %v2771_v42 }
 0x8ba   :  { %2318 = vmatprep.subr.bf16.mxu0 %v2574_v3 }
 0x8c1   :  { %2321 = vmatpush3.bf16.xpose.msk.msra.mxu0 %vm2648_vm3, %v2793_v48 }
 0x8c2   :  { %2322 = vmatprep.subr.bf16.mxu0 %v2574_v3 }
 0x8c9   :  { %2325 = vmatpush3.bf16.xpose.msk.msra.mxu0 %vm2648_vm3, %v2809_v52 }
 0x8ca   :  { %2358 = vmatprep.subr.bf16.mxu0 %v2574_v3 }
 0x963   :  { %v727_v12 = vpop.f32.mrb[4].mxu0 }
 0x964   :  { %v732_v13 = vrot.slane %v727_v12, 5  ;;  %v733_v14 = vrot.slane %v727_v12, 6  ;;  %v1945_v15 = vpop.f32.mrb[5].mxu0 }
 0x966   :  { %v736_v16 = vadd.f32 %v732_v13, %v2899_v4  ;;  %v737_v18 = vadd.f32 %v733_v14, %v2897_v0 }
 0x968   :  { %2446 = vtanh.f32 %v736_v16  ;;  %v1538_v21 = vmul.f32 -1.442695, %v736_v16  ;;  %v1539_v22 = vmul.f32 -1.442695, %v737_v18 }
 0x969   :  { %2448 = vtanh.f32 %v737_v18 }
 0x96a   :  { %2450 = vpow2.f32 %v1538_v21 }
 0x96b   :  { %2452 = vpow2.f32 %v1539_v22 }
 0x972   :  { %v2447_v19 = vpop.eup %2446 }
 0x973   :  { %v2449_v20 = vpop.eup %2448  ;;  %762 = vrot.lane.b32.xlu1 %v2447_v19, %s2577_s3 }
 0x974   :  { %764 = vrot.lane.b32.xlu0 %v2449_v20, %s2577_s3  ;;  %v2451_v25 = vpop.eup %2450 }
 0x975   :  { %v2453_v26 = vpop.eup %2452  ;;  %v744_v27 = vadd.f32 1.0, %v2451_v25 }
 0x976   :  { %v745_v28 = vadd.f32 1.0, %v2453_v26 }
 0x977   :  { %2454 = vrcp.f32 %v744_v27 }
 0x978   :  { %2456 = vrcp.f32 %v745_v28 }
 0x981   :  { %v2455_v29 = vpop.eup %2454 }
 0x982   :  { %v2457_v32 = vpop.eup %2456  ;;  %v758_v39 = vmul.f32 %v2455_v29, %v754_v37 }
 0x983   :  { %v759_v40 = vmul.f32 %v2457_v32, %v755_v38 }
 0x9e5   :  { %v763_v31 = vpop.permute.xlu1 %762 }
 0x9e6   :  { %v765_v33 = vpop.permute.xlu0 %764  ;;  %v768_v34 = vmul.f32 %v2455_v29, %v763_v31 }
 0x9e7   :  { %v769_v35 = vmul.f32 %v2457_v32, %v765_v33 }
 0x9e8   :  { %772 = vrot.lane.b32.xlu1 %v768_v34, %s2578_s4 }
 0x9e9   :  { %774 = vrot.lane.b32.xlu0 %v769_v35, %s2578_s4 }
 0xa5a   :  { %v773_v41 = vpop.permute.xlu1 %772 }
 0xa5b   :  { %v775_v44 = vpop.permute.xlu0 %774  ;;  %v3075_v45 = vadd.f32 %v773_v41, %v758_v39 }
 0xa5c   :  { %v3077_v46 = vadd.f32 %v775_v44, %v759_v40 }
 0xa5d   :  { %2458 = vtanh.f32 %v3075_v45  ;;  %v894_v25 = vrot.slane %v3075_v45, 7 }
 0xa5e   :  { %2460 = vtanh.f32 %v3077_v46  ;;  %v895_v26 = vrot.slane %v3077_v46, 7 }
 0xa67   :  { %v2459_v47 = vpop.eup %2458 }
 0xa68   :  { %v2461_v49 = vpop.eup %2460  ;;  %784 = vrot.lane.b32.xlu1 %v2459_v47, %s2577_s3 }
 0xa69   :  { %786 = vrot.lane.b32.xlu0 %v2461_v49, %s2577_s3 }
 0xada   :  { %v785_v50 = vpop.permute.xlu1 %784 }
 0xadb   :  { %v787_v51 = vpop.permute.xlu0 %786  ;;  %v790_v53 = vmul.f32 %v2455_v29, %v785_v50 }
 0xadc   :  { %v791_v54 = vmul.f32 %v2457_v32, %v787_v51 }
 0xadd   :  { %v794_v55 = vrot.slane %v790_v53, 3 }
 0xade   :  { %v795_v56 = vrot.slane %v791_v54, 2 }
 0xae0   :  { %v3084_v57 = vsel %vm377_vm5, %v795_v56, %v794_v55 }
 0xae1   :  { %797 = vrot.lane.b32.xlu1 %v3084_v57, %s2578_s4 }
 0xb53   :  { %v798_v58 = vpop.permute.xlu1 %797 }
 0xb54   :  { %1979 = vmatmul.mubr.msk.f32.vlgmr.msra.gmra.mrb[4].mxu1 %vm198_vm1, %v798_v58 }
 0xb55   :  { %2329 = vmatpush3.bf16.xpose.msk.msra.mxu1 %vm2648_vm3, %v2644_v8  ;;  %2048 = vmatprep.mubr.msk.f32.mxu1 %vm2575_vm4, %v2576_v11 }
 0xb56   :  { %2330 = vmatprep.subr.bf16.mxu1 %v2574_v3 }
 0xb5d   :  { %2333 = vmatpush3.bf16.xpose.msk.msra.mxu1 %vm2648_vm3, %v2679_v17 }
 0xb5e   :  { %2334 = vmatprep.subr.bf16.mxu1 %v2574_v3 }
 0xb65   :  { %2337 = vmatpush3.bf16.xpose.msk.msra.mxu1 %vm2648_vm3, %v2705_v24 }
 0xb66   :  { %2338 = vmatprep.subr.bf16.mxu1 %v2574_v3 }
 0xb6d   :  { %2341 = vmatpush3.bf16.xpose.msk.msra.mxu1 %vm2648_vm3, %v2727_v30 }
 0xb6e   :  { %2342 = vmatprep.subr.bf16.mxu1 %v2574_v3 }
 0xb75   :  { %2345 = vmatpush3.bf16.xpose.msk.msra.mxu1 %vm2648_vm3, %v2749_v36 }
 0xb76   :  { %2346 = vmatprep.subr.bf16.mxu1 %v2574_v3 }
 0xb7d   :  { %2349 = vmatpush3.bf16.xpose.msk.msra.mxu1 %vm2648_vm3, %v2771_v42 }
 0xb7e   :  { %2350 = vmatprep.subr.bf16.mxu1 %v2574_v3 }
 0xb85   :  { %2353 = vmatpush3.bf16.xpose.msk.msra.mxu1 %vm2648_vm3, %v2793_v48 }
 0xb86   :  { %2354 = vmatprep.subr.bf16.mxu1 %v2574_v3 }
 0xb8d   :  { %2357 = vmatpush3.bf16.xpose.msk.msra.mxu1 %vm2648_vm3, %v2809_v52 }
 0xc27   :  { %v867_v59 = vpop.f32.mrb[4].mxu1 }
 0xc28   :  { %v872_v60 = vrot.slane %v867_v59, 4  ;;  %v873_v61 = vrot.slane %v867_v59, 5  ;;  %v1980_v62 = vpop.f32.mrb[5].mxu1 }
 0xc2a   :  { %v876_v63 = vadd.f32 %v872_v60, %v2899_v4  ;;  %v877_v1 = vadd.f32 %v873_v61, %v2897_v0 }
 0xc2c   :  { %2462 = vtanh.f32 %v876_v63  ;;  %v1557_v6 = vmul.f32 -1.442695, %v876_v63  ;;  %v1558_v10 = vmul.f32 -1.442695, %v877_v1 }
 0xc2d   :  { %2464 = vtanh.f32 %v877_v1 }
 0xc2e   :  { %2466 = vpow2.f32 %v1557_v6 }
 0xc2f   :  { %2468 = vpow2.f32 %v1558_v10 }
 0xc36   :  { %v2463_v2 = vpop.eup %2462 }
 0xc37   :  { %v2465_v5 = vpop.eup %2464  ;;  %902 = vrot.lane.b32.xlu0 %v2463_v2, %s2577_s3 }
 0xc38   :  { %904 = vrot.lane.b32.xlu1 %v2465_v5, %s2577_s3  ;;  %v2467_v12 = vpop.eup %2466 }
 0xc39   :  { %v2469_v13 = vpop.eup %2468  ;;  %v884_v14 = vadd.f32 1.0, %v2467_v12 }
 0xc3a   :  { %v885_v15 = vadd.f32 1.0, %v2469_v13 }
 0xc3b   :  { %2470 = vrcp.f32 %v884_v14 }
 0xc3c   :  { %2472 = vrcp.f32 %v885_v15 }
 0xc45   :  { %v2471_v16 = vpop.eup %2470 }
 0xc46   :  { %v2473_v19 = vpop.eup %2472  ;;  %v898_v27 = vmul.f32 %v2471_v16, %v894_v25 }
 0xc47   :  { %v899_v28 = vmul.f32 %v2473_v19, %v895_v26 }
 0xca9   :  { %v903_v18 = vpop.permute.xlu0 %902 }
 0xcaa   :  { %v905_v20 = vpop.permute.xlu1 %904  ;;  %v908_v21 = vmul.f32 %v2471_v16, %v903_v18 }
 0xcab   :  { %v909_v22 = vmul.f32 %v2473_v19, %v905_v20 }
 0xcac   :  { %912 = vrot.lane.b32.xlu0 %v908_v21, %s2578_s4 }
 0xcad   :  { %914 = vrot.lane.b32.xlu1 %v909_v22, %s2578_s4 }
 0xd1e   :  { %v913_v29 = vpop.permute.xlu0 %912 }
 0xd1f   :  { %v915_v31 = vpop.permute.xlu1 %914  ;;  %v3130_v32 = vadd.f32 %v913_v29, %v898_v27 }
 0xd20   :  { %v3132_v33 = vadd.f32 %v915_v31, %v899_v28 }
 0xd21   :  { %2474 = vtanh.f32 %v3130_v32  ;;  %v1034_v59 = vrot.slane %v3130_v32, 7 }
 0xd22   :  { %2476 = vtanh.f32 %v3132_v33  ;;  %v1035_v60 = vrot.slane %v3132_v33, 7 }
 0xd2b   :  { %v2475_v34 = vpop.eup %2474 }
 0xd2c   :  { %v2477_v35 = vpop.eup %2476  ;;  %924 = vrot.lane.b32.xlu0 %v2475_v34, %s2577_s3 }
 0xd2d   :  { %926 = vrot.lane.b32.xlu1 %v2477_v35, %s2577_s3 }
 0xd9e   :  { %v925_v37 = vpop.permute.xlu0 %924 }
 0xd9f   :  { %v927_v38 = vpop.permute.xlu1 %926  ;;  %v930_v39 = vmul.f32 %v2471_v16, %v925_v37 }
 0xda0   :  { %v931_v40 = vmul.f32 %v2473_v19, %v927_v38 }
 0xda1   :  { %v934_v41 = vrot.slane %v930_v39, 4 }
 0xda2   :  { %v935_v44 = vrot.slane %v931_v40, 3 }
 0xda4   :  { %v936_v45 = vsel %vm377_vm5, %v935_v44, %v934_v41 }
 0xda5   :  { %937 = vrot.lane.b32.xlu0 %v936_v45, %s2578_s4 }
 0xe17   :  { %v3140_v46 = vpop.permute.xlu0 %937 }
 0xe18   :  { %2014 = vmatmul.mubr.msk.f32.vlgmr.msra.gmra.mrb[6].mxu0 %vm198_vm1, %v3140_v46 }
 0xe19   :  { %2361 = vmatpush3.bf16.xpose.msk.msra.mxu0 %vm2648_vm3, %v2644_v8  ;;  %2083 = vmatprep.mubr.msk.f32.mxu0 %vm2575_vm4, %v2576_v11 }
 0xe1a   :  { %2362 = vmatprep.subr.bf16.mxu0 %v2574_v3 }
 0xe21   :  { %2365 = vmatpush3.bf16.xpose.msk.msra.mxu0 %vm2648_vm3, %v2679_v17 }
 0xe22   :  { %2366 = vmatprep.subr.bf16.mxu0 %v2574_v3 }
 0xe29   :  { %2369 = vmatpush3.bf16.xpose.msk.msra.mxu0 %vm2648_vm3, %v2705_v24 }
 0xe2a   :  { %2370 = vmatprep.subr.bf16.mxu0 %v2574_v3 }
 0xe31   :  { %2373 = vmatpush3.bf16.xpose.msk.msra.mxu0 %vm2648_vm3, %v2727_v30 }
 0xe32   :  { %2374 = vmatprep.subr.bf16.mxu0 %v2574_v3 }
 0xe39   :  { %2377 = vmatpush3.bf16.xpose.msk.msra.mxu0 %vm2648_vm3, %v2749_v36 }
 0xe3a   :  { %2378 = vmatprep.subr.bf16.mxu0 %v2574_v3 }
 0xe41   :  { %2381 = vmatpush3.bf16.xpose.msk.msra.mxu0 %vm2648_vm3, %v2771_v42 }
 0xe42   :  { %2382 = vmatprep.subr.bf16.mxu0 %v2574_v3 }
 0xe49   :  { %2385 = vmatpush3.bf16.xpose.msk.msra.mxu0 %vm2648_vm3, %v2793_v48 }
 0xe4a   :  { %2386 = vmatprep.subr.bf16.mxu0 %v2574_v3 }
 0xe51   :  { %2389 = vmatpush3.bf16.xpose.msk.msra.mxu0 %vm2648_vm3, %v2809_v52 }
 0xeeb   :  { %v1007_v8 = vpop.f32.mrb[6].mxu0 }
 0xeec   :  { %v1012_v11 = vrot.slane %v1007_v8, 3  ;;  %v1013_v17 = vrot.slane %v1007_v8, 4  ;;  %v2015_v24 = vpop.f32.mrb[7].mxu0 }
 0xeee   :  { %v1016_v30 = vadd.f32 %v1012_v11, %v2899_v4  ;;  %v1017_v36 = vadd.f32 %v1013_v17, %v2897_v0 }
 0xef0   :  { %2478 = vtanh.f32 %v1016_v30  ;;  %v1576_v3 = vmul.f32 -1.442695, %v1016_v30  ;;  %v1577_v48 = vmul.f32 -1.442695, %v1017_v36 }
 0xef1   :  { %2480 = vtanh.f32 %v1017_v36 }
 0xef2   :  { %2482 = vpow2.f32 %v1576_v3 }
 0xef3   :  { %2484 = vpow2.f32 %v1577_v48 }
 0xefa   :  { %v2479_v42 = vpop.eup %2478 }
 0xefb   :  { %v2481_v47 = vpop.eup %2480  ;;  %1042 = vrot.lane.b32.xlu1 %v2479_v42, %s2577_s3 }
 0xefc   :  { %1044 = vrot.lane.b32.xlu0 %v2481_v47, %s2577_s3  ;;  %v2483_v9 = vpop.eup %2482 }
 0xefd   :  { %v2485_v52 = vpop.eup %2484  ;;  %v1024_v49 = vadd.f32 1.0, %v2483_v9 }
 0xefe   :  { %v1025_v50 = vadd.f32 1.0, %v2485_v52 }
 0xeff   :  { %2486 = vrcp.f32 %v1024_v49 }
 0xf00   :  { %2488 = vrcp.f32 %v1025_v50 }
 0xf09   :  { %v2487_v51 = vpop.eup %2486 }
 0xf0a   :  { %v2489_v54 = vpop.eup %2488  ;;  %v1038_v61 = vmul.f32 %v2487_v51, %v1034_v59 }
 0xf0b   :  { %v1039_v62 = vmul.f32 %v2489_v54, %v1035_v60 }
 0xf6d   :  { %v1043_v53 = vpop.permute.xlu1 %1042 }
 0xf6e   :  { %v1045_v55 = vpop.permute.xlu0 %1044  ;;  %v1048_v56 = vmul.f32 %v2487_v51, %v1043_v53 }
 0xf6f   :  { %v1049_v58 = vmul.f32 %v2489_v54, %v1045_v55 }
 0xf70   :  { %1052 = vrot.lane.b32.xlu1 %v1048_v56, %s2578_s4 }
 0xf71   :  { %1054 = vrot.lane.b32.xlu0 %v1049_v58, %s2578_s4 }
 0xfe2   :  { %v1053_v63 = vpop.permute.xlu1 %1052 }
 0xfe3   :  { %v1055_v1 = vpop.permute.xlu0 %1054  ;;  %v1058_v2 = vadd.f32 %v1053_v63, %v1038_v61 }
 0xfe4   :  { %v1059_v5 = vadd.f32 %v1055_v1, %v1039_v62 }
 0xfe5   :  { %2490 = vtanh.f32 %v1058_v2  ;;  %v1174_v11 = vrot.slane %v1058_v2, 7 }
 0xfe6   :  { %2492 = vtanh.f32 %v1059_v5  ;;  %v1175_v17 = vrot.slane %v1059_v5, 7 }
 0xfef   :  { %v2491_v6 = vpop.eup %2490 }
 0xff0   :  { %v2493_v10 = vpop.eup %2492  ;;  %1064 = vrot.lane.b32.xlu1 %v2491_v6, %s2577_s3 }
 0xff1   :  { %1066 = vrot.lane.b32.xlu0 %v2493_v10, %s2577_s3 }
0x1062   :  { %v1065_v12 = vpop.permute.xlu1 %1064 }
0x1063   :  { %v1067_v13 = vpop.permute.xlu0 %1066  ;;  %v1070_v14 = vmul.f32 %v2487_v51, %v1065_v12 }
0x1064   :  { %v1071_v15 = vmul.f32 %v2489_v54, %v1067_v13 }
0x1065   :  { %v1074_v16 = vrot.slane %v1070_v14, 5 }
0x1066   :  { %v1075_v18 = vrot.slane %v1071_v15, 4 }
0x1068   :  { %v3188_v19 = vsel %vm377_vm5, %v1075_v18, %v1074_v16 }
0x1069   :  { %1077 = vrot.lane.b32.xlu1 %v3188_v19, %s2578_s4 }
0x10db   :  { %v1078_v20 = vpop.permute.xlu1 %1077 }
0x10dc   :  { %2049 = vmatmul.mubr.msk.f32.vlgmr.msra.gmra.mrb[6].mxu1 %vm198_vm1, %v1078_v20 }
0x11af   :  { %v1147_v21 = vpop.f32.mrb[6].mxu1 }
0x11b0   :  { %v1152_v22 = vrot.slane %v1147_v21, 2  ;;  %v1153_v25 = vrot.slane %v1147_v21, 3  ;;  %v2050_v26 = vpop.f32.mrb[7].mxu1 }
0x11b2   :  { %v1156_v27 = vadd.f32 %v1152_v22, %v2899_v4  ;;  %v1157_v28 = vadd.f32 %v1153_v25, %v2897_v0 }
0x11b4   :  { %2494 = vtanh.f32 %v1156_v27  ;;  %v1595_v32 = vmul.f32 -1.442695, %v1156_v27  ;;  %v1596_v33 = vmul.f32 -1.442695, %v1157_v28 }
0x11b5   :  { %2496 = vtanh.f32 %v1157_v28 }
0x11b6   :  { %2498 = vpow2.f32 %v1595_v32 }
0x11b7   :  { %2500 = vpow2.f32 %v1596_v33 }
0x11be   :  { %v2495_v29 = vpop.eup %2494 }
0x11bf   :  { %v2497_v31 = vpop.eup %2496  ;;  %1182 = vrot.lane.b32.xlu0 %v2495_v29, %s2577_s3 }
0x11c0   :  { %1184 = vrot.lane.b32.xlu1 %v2497_v31, %s2577_s3  ;;  %v2499_v34 = vpop.eup %2498 }
0x11c1   :  { %v2501_v35 = vpop.eup %2500  ;;  %v1164_v37 = vadd.f32 1.0, %v2499_v34 }
0x11c2   :  { %v1165_v38 = vadd.f32 1.0, %v2501_v35 }
0x11c3   :  { %2502 = vrcp.f32 %v1164_v37 }
0x11c4   :  { %2504 = vrcp.f32 %v1165_v38 }
0x11cd   :  { %v2503_v39 = vpop.eup %2502 }
0x11ce   :  { %v2505_v41 = vpop.eup %2504  ;;  %v1178_v24 = vmul.f32 %v2503_v39, %v1174_v11 }
0x11cf   :  { %v1179_v30 = vmul.f32 %v2505_v41, %v1175_v17 }
0x1231   :  { %v1183_v40 = vpop.permute.xlu0 %1182 }
0x1232   :  { %v1185_v44 = vpop.permute.xlu1 %1184  ;;  %v1188_v45 = vmul.f32 %v2503_v39, %v1183_v40 }
0x1233   :  { %v1189_v8 = vmul.f32 %v2505_v41, %v1185_v44 }
0x1234   :  { %1192 = vrot.lane.b32.xlu0 %v1188_v45, %s2578_s4 }
0x1235   :  { %1194 = vrot.lane.b32.xlu1 %v1189_v8, %s2578_s4 }
0x12a6   :  { %v1193_v36 = vpop.permute.xlu0 %1192 }
0x12a7   :  { %v1195_v42 = vpop.permute.xlu1 %1194  ;;  %v1198_v47 = vadd.f32 %v1193_v36, %v1178_v24 }
0x12a8   :  { %v1199_v3 = vadd.f32 %v1195_v42, %v1179_v30 }
0x12a9   :  { %2506 = vtanh.f32 %v1198_v47  ;;  %v1314_v21 = vrot.slane %v1198_v47, 7 }
0x12aa   :  { %2508 = vtanh.f32 %v1199_v3  ;;  %v1315_v22 = vrot.slane %v1199_v3, 7 }
0x12b3   :  { %v2507_v48 = vpop.eup %2506 }
0x12b4   :  { %v2509_v9 = vpop.eup %2508  ;;  %1204 = vrot.lane.b32.xlu0 %v2507_v48, %s2577_s3 }
0x12b5   :  { %1206 = vrot.lane.b32.xlu1 %v2509_v9, %s2577_s3 }
0x1326   :  { %v1205_v52 = vpop.permute.xlu0 %1204 }
0x1327   :  { %v1207_v49 = vpop.permute.xlu1 %1206  ;;  %v1210_v50 = vmul.f32 %v2503_v39, %v1205_v52 }
0x1328   :  { %v1211_v51 = vmul.f32 %v2505_v41, %v1207_v49 }
0x1329   :  { %v1214_v53 = vrot.slane %v1210_v50, 6 }
0x132a   :  { %v1215_v54 = vrot.slane %v1211_v51, 5 }
0x132c   :  { %v1216_v55 = vsel %vm377_vm5, %v1215_v54, %v1214_v53 }
0x132d   :  { %1217 = vrot.lane.b32.xlu0 %v1216_v55, %s2578_s4 }
0x139f   :  { %v1218_v56 = vpop.permute.xlu0 %1217 }
0x13a0   :  { %2084 = vmatmul.mubr.msk.f32.vlgmr.msra.gmra.mrb[8].mxu0 %vm198_vm1, %v1218_v56 }
0x1473   :  { %v1287_v58 = vpop.f32.mrb[8].mxu0 }
0x1474   :  { %v1292_v59 = vrot.slane %v1287_v58, 1  ;;  %v1293_v60 = vrot.slane %v1287_v58, 2  ;;  %v2085_v61 = vpop.f32.mrb[9].mxu0 }
0x1476   :  { %v1296_v62 = vadd.f32 %v1292_v59, %v2899_v4  ;;  %v1297_v63 = vadd.f32 %v1293_v60, %v2897_v0 }
0x1478   :  { %2510 = vtanh.f32 %v1296_v62  ;;  %v1614_v5 = vmul.f32 -1.442695, %v1296_v62  ;;  %v1615_v6 = vmul.f32 -1.442695, %v1297_v63 }
0x1479   :  { %2512 = vtanh.f32 %v1297_v63 }
0x147a   :  { %2514 = vpow2.f32 %v1614_v5 }
0x147b   :  { %2516 = vpow2.f32 %v1615_v6 }
0x1482   :  { %v2511_v1 = vpop.eup %2510 }
0x1483   :  { %v2513_v2 = vpop.eup %2512  ;;  %1322 = vrot.lane.b32.xlu0 %v2511_v1, %s2577_s3 }
0x1484   :  { %1324 = vrot.lane.b32.xlu1 %v2513_v2, %s2577_s3  ;;  %v2515_v10 = vpop.eup %2514 }
0x1485   :  { %v2517_v12 = vpop.eup %2516  ;;  %v1304_v13 = vadd.f32 1.0, %v2515_v10 }
0x1486   :  { %v1305_v14 = vadd.f32 1.0, %v2517_v12 }
0x1487   :  { %2518 = vrcp.f32 %v1304_v13 }
0x1488   :  { %2520 = vrcp.f32 %v1305_v14 }
0x1491   :  { %v2519_v4 = vpop.eup %2518 }
0x1492   :  { %v2521_v15 = vpop.eup %2520  ;;  %v1318_v25 = vmul.f32 %v2519_v4, %v1314_v21 }
0x1493   :  { %v1319_v26 = vmul.f32 %v2521_v15, %v1315_v22 }
0x14f5   :  { %v1323_v0 = vpop.permute.xlu0 %1322 }
0x14f6   :  { %v1325_v16 = vpop.permute.xlu1 %1324  ;;  %v1328_v18 = vmul.f32 %v2519_v4, %v1323_v0 }
0x14f7   :  { %v1329_v20 = vmul.f32 %v2521_v15, %v1325_v16 }
0x14f8   :  { %1332 = vrot.lane.b32.xlu0 %v1328_v18, %s2578_s4 }
0x14f9   :  { %1334 = vrot.lane.b32.xlu1 %v1329_v20, %s2578_s4 }
0x156a   :  { %v1333_v27 = vpop.permute.xlu0 %1332 }
0x156b   :  { %v1335_v28 = vpop.permute.xlu1 %1334  ;;  %v1338_v29 = vadd.f32 %v1333_v27, %v1318_v25 }
0x156c   :  { %v1339_v31 = vadd.f32 %v1335_v28, %v1319_v26 }
0x156d   :  { %2522 = vtanh.f32 %v1338_v29 }
0x156e   :  { %2524 = vtanh.f32 %v1339_v31 }
0x1577   :  { %v2523_v32 = vpop.eup %2522 }
0x1578   :  { %v2525_v33 = vpop.eup %2524  ;;  %1344 = vrot.lane.b32.xlu0 %v2523_v32, %s2577_s3 }
0x1579   :  { %1346 = vrot.lane.b32.xlu1 %v2525_v33, %s2577_s3 }
0x157c   :  { %1361 = vrot.lane.b32.xlu0 %v3188_v19, %s2577_s3 }
0x157d   :  { %1353 = vrot.lane.b32.xlu1 %v2972_v23, %s2577_s3  ;;  %v1406_v23 = vrot.slane %v1339_v31, 7 }
0x1580   :  { %1364 = vrot.lane.b32.xlu0 %v1216_v55, %s2579_s24 }
0x1581   :  { %1356 = vrot.lane.b32.xlu1 %v3028_v7, %s2579_s24 }
0x15ea   :  { %v1345_v34 = vpop.permute.xlu0 %1344 }
0x15eb   :  { %v1347_v35 = vpop.permute.xlu1 %1346  ;;  %v1350_v37 = vmul.f32 %v2519_v4, %v1345_v34 }
0x15ec   :  { %v1351_v38 = vmul.f32 %v2521_v15, %v1347_v35 }
0x15ed   :  { %1394 = vrot.lane.b32.xlu1 %v1350_v37, %s2578_s4  ;;  %v1369_v44 = vrot.slane %v1350_v37, 7 }
0x15ee   :  { %v1393_v39 = vrot.slane %v1351_v38, 7  ;;  %v1362_v40 = vpop.permute.xlu0 %1361  ;;  %v1370_v41 = vrot.slane %v1351_v38, 6 }
0x15ef   :  { %v1354_v45 = vpop.permute.xlu1 %1353  ;;  %v1378_v7 = vsel %vm198_vm1, %v3140_v46, %v1362_v40 }
0x15f0   :  { %1396 = vrot.lane.b32.xlu0 %v1393_v39, %s2578_s4  ;;  %v1373_v8 = vsel %vm198_vm1, %v2917_v43, %v1354_v45  ;;  %v1371_v17 = vsel %vm377_vm5, %v1370_v41, %v1369_v44 }
0x15f1   :  { %1407 = vrot.lane.b32.xlu1 %v1338_v29, %s2579_s24 }
0x15f2   :  { %v1365_v19 = vpop.permute.xlu0 %1364 }
0x15f3   :  { %v1357_v11 = vpop.permute.xlu1 %1356  ;;  %v1379_v24 = vsel %vm1374_vm6, %v1378_v7, %v1365_v19 }
0x15f4   :  { %v1375_v30 = vsel %vm1374_vm6, %v1373_v8, %v1357_v11  ;;  %v1380_v36 = vsel %vm1376_vm7, %v1379_v24, %v1371_v17  ;;  %1409 = vrot.lane.b32.xlu0 %v1406_v23, %s2579_s24 }
0x15f5   :  { %v1377_v42 = vsel %vm1376_vm7, %v1375_v30, %v3084_v57 }
0x15f6   :  { %v1383_v47 = vcombine.low %v1377_v42, %v1380_v36 }
0x15f8   :  { %1616 = vst.sshfl [vmem:[%s3259_s5] sm:$0x33 pattern:$0x76325410] %v1383_v47 }
0x165f   :  { %v1395_v46 = vpop.permute.xlu1 %1394 }
0x1660   :  { %1401 = vst.msk [vmem:[#allocation2 - $0x7] sm:$0x80] %vm1400_vm8, %v1395_v46 }
0x1662   :  { %v1397_v43 = vpop.permute.xlu0 %1396 }
0x1663   :  { %1403 = vst.msk [vmem:[#allocation2 + $0x1] sm:$0x1] %vm1402_vm9, %v1397_v43  ;;  %v1408_v3 = vpop.permute.xlu1 %1407 }
0x1664   :  { %1413 = vst.msk [vmem:[#allocation4 - $0x7] sm:$0x80] %vm1400_vm8, %v1408_v3 }
0x1665   :  { %2537 = shalt.err (!%p2534_p4)
}
0x1666   :  { %s2538_s10 = scalar_lea.hbm %s3260_s6, 32 }
0x1667   :  { %p2539_p5 = scmp.ne.s32.totalorder %s3260_s6, %s2538_s10  ;;  %p2542_p6 = scmp.lt.u32.totalorder %s2538_s10, %s3260_s6 }
0x1669   :  { %p2544_p7 = pnand %p2542_p6, %p2539_p5 }
0x166b   :  { %2547 = shalt.err (!%p2544_p7)
}
0x166c   :  { %1426 = dma.vmem_to_hbm [thread:$0]  %s1424_s28, 32, %s3260_s6, [#allocation3]   ;;  %v1410_v57 = vpop.permute.xlu0 %1409 }
0x166d   :  { %1414 = vst.msk [vmem:[#allocation4 + $0x1] sm:$0x1] %vm1402_vm9, %v1410_v57  ;;  %s2548_s17 = scalar_lea.vmem %s1434_s30, 32  ;;  %p2553_p9 = scmp.lt.s32.totalorder %s1434_s30, %s1434_s30 }
0x166e   :  { %p2549_p8 = scmp.ne.s32.totalorder %s1434_s30, %s2548_s17  ;;  %p2554_p10 = scmp.lt.s32.totalorder %s2548_s17, %s2548_s17 }
0x1670   :  { %p2555_p11 = por %p2554_p10, %p2553_p9 }
0x1672   :  { %p2556_p12 = pnand %p2555_p11, %p2549_p8 }
0x1674   :  { %2559 = shalt.err (!%p2556_p12)
}
0x1675   :  { %s2560_s19 = scalar_lea.hbm %s3261_s7, 32 }
0x1676   :  { %p2561_p13 = scmp.ne.s32.totalorder %s3261_s7, %s2560_s19  ;;  %p2564_p0 = scmp.lt.u32.totalorder %s2560_s19, %s3261_s7 }
0x1678   :  { %p2566_p1 = pnand %p2564_p0, %p2561_p13 }
0x167a   :  { %2569 = shalt.err (!%p2566_p1)
}
0x167b   :  { %1436 = dma.vmem_to_hbm [thread:$0]  %s1434_s30, 32, %s3261_s7, [#allocation5]  }
0x167c   :  { %2570 = dma.done.wait [#allocation3], 32  }
0x167d   :  { %2571 = vsyncadd [#allocation3], 4294967264 }
0x167e   :  { %2572 = dma.done.wait [#allocation5], 32  }
0x167f   :  { %2573 = vsyncadd [#allocation5], 4294967264 }
0x1680   :  { %1445 = vsyncpa [#allocation3], 1 }
0x1681   :  { %1446 = vsyncpa [#allocation5], 1 }

</bundles_post_ra>
